<compile_context>
chip_gen: v6e
topology: v6e:2x2x1
jax: 0.10.0
libtpu: 0.0.40
codegen_flags: <defaults>
</compile_context>

<pallas_src>
import functools

import jax
import jax.numpy as jnp
from jax import lax
from jax.experimental import pallas as pl
from jax.experimental.pallas import tpu as pltpu

_LANES = 128
_SUBLANES = 8
_NUM_SPLITS = 2                                   # leading "parallel" axis (v7x dual TC)
_ALIGN = _NUM_SPLITS * _SUBLANES * _LANES         # 2048 elements
_BLOCK_ROWS = 8192                                # 4 MiB f32 / 2 MiB bf16 per input/step
_MIN_KERNEL_ELEMENTS = 65536                      # below this, fused XLA wins
_VMEM_LIMIT_BYTES = 32 * 1024 * 1024              # covers 2 inputs x 2 bufs x 4 MiB + slack

_KERNEL_DTYPES = (jnp.dtype(jnp.float32), jnp.dtype(jnp.bfloat16))


def _mse_partial_kernel(pred_ref, target_ref, out_ref, *, block_rows, acc_rows,
                        rows_tail):
    """Accumulates sum((pred-target)^2) into a per-core (acc_rows, 128) partial."""
    step = pl.program_id(1)

    @pl.when(step == 0)
    def _():
        out_ref[...] = jnp.zeros_like(out_ref)

    def _accumulate(mask_rows):
        diff = (pred_ref[0].astype(jnp.float32)
                - target_ref[0].astype(jnp.float32))
        sq = diff * diff
        if mask_rows:
            # Only the last step overhangs rows_half; neutralize garbage rows.
            row = lax.broadcasted_iota(jnp.int32, (block_rows, _LANES), 0)
            sq = jnp.where(row < rows_tail, sq, 0.0)
        # Fold onto acc_rows sublane-rows: several independent VALU add chains.
        out_ref[0] += sq.reshape(block_rows // acc_rows, acc_rows, _LANES).sum(axis=0)

    if rows_tail == 0:
        # rows_half divides evenly into blocks: no masking anywhere.
        _accumulate(False)
    else:
        last = pl.num_programs(1) - 1

        @pl.when(step != last)
        def _():
            _accumulate(False)

        @pl.when(step == last)
        def _():
            _accumulate(True)


def _xla_sq_err_sum(pred, target):
    d = pred.astype(jnp.float32) - target.astype(jnp.float32)
    return jnp.sum(d * d)


def mse_loss(pred, target, *, block_rows=_BLOCK_ROWS,
             min_kernel_elements=_MIN_KERNEL_ELEMENTS):
    """MSELoss(reduction='sum')(pred.view(-1,1), target.view(-1,1)) / len(pred)."""
    pred_f = jnp.asarray(pred).reshape(-1)
    target_f = jnp.asarray(target).reshape(-1)
    if jnp.dtype(pred_f.dtype) not in _KERNEL_DTYPES:
        pred_f = pred_f.astype(jnp.float32)
    if jnp.dtype(target_f.dtype) not in _KERNEL_DTYPES:
        target_f = target_f.astype(jnp.float32)

    n = pred_f.shape[0]
    assert target_f.shape[0] == n, "pred/target must have the same element count"

    n_main = (n // _ALIGN) * _ALIGN
    if n < min_kernel_elements or n_main == 0:
        # Small regression-head inputs: launch overhead dominates; use fused XLA.
        return _xla_sq_err_sum(pred_f, target_f) / jnp.float32(n)

    rows_half = n_main // (_NUM_SPLITS * _LANES)     # multiple of 8
    block_rows = min(int(block_rows), rows_half)
    if block_rows < rows_half:
        # Keep partial blocks a multiple of 16 rows (bf16 packs 2 rows per sublane).
        block_rows = max(16, (block_rows // 16) * 16)
    steps = (rows_half + block_rows - 1) // block_rows
    rows_tail = rows_half % block_rows               # 0 => fully unmasked kernel

    if block_rows % 32 == 0:
        acc_rows = 32
    elif block_rows % 16 == 0:
        acc_rows = 16
    else:
        acc_rows = 8

    pred_main = pred_f[:n_main].reshape(_NUM_SPLITS, rows_half, _LANES)
    target_main = target_f[:n_main].reshape(_NUM_SPLITS, rows_half, _LANES)

    kernel = functools.partial(
        _mse_partial_kernel, block_rows=block_rows, acc_rows=acc_rows,
        rows_tail=rows_tail)

    partials = pl.pallas_call(
        kernel,
        out_shape=jax.ShapeDtypeStruct((_NUM_SPLITS, acc_rows, _LANES), jnp.float32),
        grid_spec=pltpu.PrefetchScalarGridSpec(
            num_scalar_prefetch=0,
            grid=(_NUM_SPLITS, steps),
            in_specs=[
                pl.BlockSpec((1, block_rows, _LANES), lambda c, i: (c, i, 0)),
                pl.BlockSpec((1, block_rows, _LANES), lambda c, i: (c, i, 0)),
            ],
            # Same out block across the reduction axis -> VMEM-resident accumulator.
            out_specs=pl.BlockSpec((1, acc_rows, _LANES), lambda c, i: (c, 0, 0)),
        ),
        compiler_params=pltpu.CompilerParams(
            dimension_semantics=("parallel", "arbitrary"),
            vmem_limit_bytes=_VMEM_LIMIT_BYTES,
        ),
    )(pred_main, target_main)

    total = jnp.sum(partials)
    if n_main != n:
        # Ragged tail (< 2048 elements) reduced in XLA; avoids padding copies.
        total = total + _xla_sq_err_sum(pred_f[n_main:], target_f[n_main:])
    return total / jnp.float32(n)


def _ref_loss(pred, target):
    p = jnp.asarray(pred, jnp.float32).reshape(-1, 1)
    t = jnp.asarray(target, jnp.float32).reshape(-1, 1)
    return jnp.sum((p - t) ** 2) / p.shape[0]


if __name__ == "__main__":
    key = jax.random.PRNGKey(0)
    k1, k2, k3, k4, k5, k6 = jax.random.split(key, 6)

    # 1) Typical regression-head shape: (batch, 1). Small -> fused-XLA fast path.
    pred = jax.random.normal(k1, (32, 1), dtype=jnp.float32)
    target = jax.random.normal(k2, (32, 1), dtype=jnp.float32)
    loss = mse_loss(pred, target)
    jax.block_until_ready(loss)
    assert jnp.allclose(loss, _ref_loss(pred, target), rtol=1e-5, atol=1e-5), (
        loss, _ref_loss(pred, target))

    # 2) Misaligned 1-D f32 stream exercising the Pallas kernel: multi-step grid,
    #    last-step row-overhang mask, and the XLA ragged tail.
    pred2 = jax.random.normal(k3, (70001,), dtype=jnp.float32)
    target2 = jax.random.normal(k4, (70001,), dtype=jnp.float32)
    loss2 = mse_loss(pred2, target2, block_rows=64, min_kernel_elements=1)
    jax.block_until_ready(loss2)
    assert jnp.allclose(loss2, _ref_loss(pred2, target2), rtol=1e-5, atol=1e-5), (
        loss2, _ref_loss(pred2, target2))

    # 3) bf16 inputs streamed natively (upcast inside the kernel).
    pred3 = jax.random.normal(k5, (4096, 1), dtype=jnp.bfloat16)
    target3 = jax.random.normal(k6, (4096, 1), dtype=jnp.bfloat16)
    loss3 = mse_loss(pred3, target3, min_kernel_elements=1)
    jax.block_until_ready(loss3)
    assert jnp.allclose(loss3, _ref_loss(pred3, target3), rtol=1e-3, atol=1e-3), (
        loss3, _ref_loss(pred3, target3))

    print("KERNEL_OK")
</pallas_src>

<mosaic_0001>
module attributes {stable_mosaic.version = 11 : i64} {
  func.func @_mse_partial_kernel(%arg0: i32, %arg1: i32, %arg2: memref<1x64x128xf32, #tpu.memory_space<vmem>>, %arg3: memref<1x64x128xf32, #tpu.memory_space<vmem>>, %arg4: memref<1x32x128xf32, #tpu.memory_space<vmem>>) attributes {dimension_semantics = [#tpu.dimension_semantics<parallel>, #tpu.dimension_semantics<arbitrary>], iteration_bounds = array<i64: 2, 5>, scalar_prefetch = 0 : i64, scratch_operands = 0 : i64, tpu.core_type = #tpu.core_type<tc>, window_params = [{transform_indices = @transform_0, window_bounds = array<i64: 1, 64, 128>}, {transform_indices = @transform_1, window_bounds = array<i64: 1, 64, 128>}, {transform_indices = @transform_2, window_bounds = array<i64: 1, 32, 128>}]} {
    %c0_i32 = arith.constant 0 : i32
    %0 = arith.cmpi eq, %arg1, %c0_i32 : i32
    %1 = arith.extui %0 : i1 to i32
    %c0_i32_0 = arith.constant 0 : i32
    %2 = arith.cmpi ne, %1, %c0_i32_0 : i32
    scf.if %2 {
      %cst = arith.constant 0.000000e+00 : f32
      %9 = vector.broadcast %cst : f32 to vector<1x32x128xf32>
      %c0 = arith.constant 0 : index
      %c0_4 = arith.constant 0 : index
      %c0_5 = arith.constant 0 : index
      %10 = vector.load %arg4[%c0, %c0_4, %c0_5] : memref<1x32x128xf32, #tpu.memory_space<vmem>>, vector<1x32x128xf32>
      tpu.vector_store %arg4[%c0, %c0_4, %c0_5], %9 {strides = array<i32>} : memref<1x32x128xf32, #tpu.memory_space<vmem>>, vector<1x32x128xf32>,
    } else {
    }
    %c4_i32 = arith.constant 4 : i32
    %3 = arith.cmpi ne, %arg1, %c4_i32 : i32
    %4 = arith.extui %3 : i1 to i32
    %c0_i32_1 = arith.constant 0 : i32
    %5 = arith.cmpi ne, %4, %c0_i32_1 : i32
    scf.if %5 {
      %c0 = arith.constant 0 : index
      %c0_4 = arith.constant 0 : index
      %c0_5 = arith.constant 0 : index
      %9 = vector.load %arg2[%c0, %c0_4, %c0_5] : memref<1x64x128xf32, #tpu.memory_space<vmem>>, vector<1x64x128xf32>
      %10 = vector.shape_cast %9 : vector<1x64x128xf32> to vector<64x128xf32>
      %c0_6 = arith.constant 0 : index
      %c0_7 = arith.constant 0 : index
      %c0_8 = arith.constant 0 : index
      %11 = vector.load %arg3[%c0_6, %c0_7, %c0_8] : memref<1x64x128xf32, #tpu.memory_space<vmem>>, vector<1x64x128xf32>
      %12 = vector.shape_cast %11 : vector<1x64x128xf32> to vector<64x128xf32>
      %13 = arith.subf %10, %12 : vector<64x128xf32>
      %14 = arith.mulf %13, %13 : vector<64x128xf32>
      %c0_9 = arith.constant 0 : index
      %c0_10 = arith.constant 0 : index
      %c0_11 = arith.constant 0 : index
      %15 = vector.load %arg4[%c0_9, %c0_10, %c0_11] : memref<1x32x128xf32, #tpu.memory_space<vmem>>, vector<1x32x128xf32>
      %16 = vector.shape_cast %15 : vector<1x32x128xf32> to vector<32x128xf32>
      %17 = vector.shape_cast %14 : vector<64x128xf32> to vector<2x32x128xf32>
      %cst = arith.constant dense<0.000000e+00> : vector<32x128xf32>
      %18 = vector.multi_reduction <add>, %17, %cst [0] : vector<2x32x128xf32> to vector<32x128xf32>
      %19 = arith.addf %16, %18 : vector<32x128xf32>
      %c0_12 = arith.constant 0 : index
      %c0_13 = arith.constant 0 : index
      %c0_14 = arith.constant 0 : index
      %20 = vector.load %arg4[%c0_12, %c0_13, %c0_14] : memref<1x32x128xf32, #tpu.memory_space<vmem>>, vector<1x32x128xf32>
      %21 = vector.shape_cast %20 : vector<1x32x128xf32> to vector<32x128xf32>
      %22 = vector.shape_cast %19 : vector<32x128xf32> to vector<1x32x128xf32>
      tpu.vector_store %arg4[%c0_12, %c0_13, %c0_14], %22 {strides = array<i32>} : memref<1x32x128xf32, #tpu.memory_space<vmem>>, vector<1x32x128xf32>,
    } else {
    }
    %c4_i32_2 = arith.constant 4 : i32
    %6 = arith.cmpi eq, %arg1, %c4_i32_2 : i32
    %7 = arith.extui %6 : i1 to i32
    %c0_i32_3 = arith.constant 0 : i32
    %8 = arith.cmpi ne, %7, %c0_i32_3 : i32
    scf.if %8 {
      %c0 = arith.constant 0 : index
      %c0_4 = arith.constant 0 : index
      %c0_5 = arith.constant 0 : index
      %9 = vector.load %arg2[%c0, %c0_4, %c0_5] : memref<1x64x128xf32, #tpu.memory_space<vmem>>, vector<1x64x128xf32>
      %10 = vector.shape_cast %9 : vector<1x64x128xf32> to vector<64x128xf32>
      %c0_6 = arith.constant 0 : index
      %c0_7 = arith.constant 0 : index
      %c0_8 = arith.constant 0 : index
      %11 = vector.load %arg3[%c0_6, %c0_7, %c0_8] : memref<1x64x128xf32, #tpu.memory_space<vmem>>, vector<1x64x128xf32>
      %12 = vector.shape_cast %11 : vector<1x64x128xf32> to vector<64x128xf32>
      %13 = arith.subf %10, %12 : vector<64x128xf32>
      %14 = arith.mulf %13, %13 : vector<64x128xf32>
      %15 = tpu.iota {dimensions = array<i32: 0>} : vector<64x128xi32>
      %c16_i32 = arith.constant 16 : i32
      %16 = vector.broadcast %c16_i32 : i32 to vector<64x128xi32>
      %17 = arith.cmpi slt, %15, %16 : vector<64x128xi32>
      %cst = arith.constant 0.000000e+00 : f32
      %18 = vector.broadcast %cst : f32 to vector<64x128xf32>
      %19 = arith.select %17, %14, %18 : vector<64x128xi1>, vector<64x128xf32>
      %c0_9 = arith.constant 0 : index
      %c0_10 = arith.constant 0 : index
      %c0_11 = arith.constant 0 : index
      %20 = vector.load %arg4[%c0_9, %c0_10, %c0_11] : memref<1x32x128xf32, #tpu.memory_space<vmem>>, vector<1x32x128xf32>
      %21 = vector.shape_cast %20 : vector<1x32x128xf32> to vector<32x128xf32>
      %22 = vector.shape_cast %19 : vector<64x128xf32> to vector<2x32x128xf32>
      %cst_12 = arith.constant dense<0.000000e+00> : vector<32x128xf32>
      %23 = vector.multi_reduction <add>, %22, %cst_12 [0] : vector<2x32x128xf32> to vector<32x128xf32>
      %24 = arith.addf %21, %23 : vector<32x128xf32>
      %c0_13 = arith.constant 0 : index
      %c0_14 = arith.constant 0 : index
      %c0_15 = arith.constant 0 : index
      %25 = vector.load %arg4[%c0_13, %c0_14, %c0_15] : memref<1x32x128xf32, #tpu.memory_space<vmem>>, vector<1x32x128xf32>
      %26 = vector.shape_cast %25 : vector<1x32x128xf32> to vector<32x128xf32>
      %27 = vector.shape_cast %24 : vector<32x128xf32> to vector<1x32x128xf32>
      tpu.vector_store %arg4[%c0_13, %c0_14, %c0_15], %27 {strides = array<i32>} : memref<1x32x128xf32, #tpu.memory_space<vmem>>, vector<1x32x128xf32>,
    } else {
    }
    return
  }
  func.func @transform_0(%arg0: i32, %arg1: i32) -> (i32, i32, i32) {
    %c0_i32 = arith.constant 0 : i32
    %c0_i32_0 = arith.constant 0 : i32
    return %arg0, %arg1, %c0_i32 : i32, i32, i32
  }
  func.func @transform_1(%arg0: i32, %arg1: i32) -> (i32, i32, i32) {
    %c0_i32 = arith.constant 0 : i32
    %c0_i32_0 = arith.constant 0 : i32
    return %arg0, %arg1, %c0_i32 : i32, i32, i32
  }
  func.func @transform_2(%arg0: i32, %arg1: i32) -> (i32, i32, i32) {
    %c0_i32 = arith.constant 0 : i32
    %c0_i32_0 = arith.constant 0 : i32
    %c0_i32_1 = arith.constant 0 : i32
    return %arg0, %c0_i32, %c0_i32_0 : i32, i32, i32
  }
}

</mosaic_0001>

<bundles_post_ra>
// kernel: tpu_custom_call.1
= control target key start
LH: loop header
LB: loop body
LE: loop exit
PB: predicated region body
PF: predicated region fallthrough
CT: control target
= control target key end

     0   :  { %7 = vsyncpa [#allocation3], 0  ;;  %s1155_s0 = inlined_call_operand.hbm [shape: f32[2,272,128], index: 0, kind: input, shape index: {}]   ;;  %s1156_s1 = inlined_call_operand.hbm [shape: f32[2,272,128], index: 1, kind: input, shape index: {}]   ;;  %s1157_s2 = inlined_call_operand.hbm [shape: f32[2,32,128], index: 2, kind: output, shape index: {}]  }
   0x1   :  { %9 = vsyncpa [#allocation3 + $0x1], 0 }
   0x2   :  { %10 = vsyncpa [#allocation6], 0 }
   0x3   :  { %12 = vsyncpa [#allocation6 + $0x1], 0 }
   0x4   :  { %13 = vsyncpa [#allocation4], 0 }
   0x5   :  { %15 = vsyncpa [#allocation4 + $0x1], 0  ;;  %s848_s9 = smov 0   ;;  %s850_s10 = smov 0  }
   0x6   :  { %s852_s11 = smov 0   ;;  %s854_s12 = smov 0  }
   0x7   :  { %s856_s13 = smov 0   ;;  %s858_s14 = smov 0  }
   0x8   :  { %s860_s15 = smov 0   ;;  %s862_s16 = smov 0  }
   0x9   :  { %s864_s17 = smov 0   ;;  %s866_s18 = smov 0  }
   0xa   :  { %s868_s19 = smov 0  }
   0xb LB: > { %s508_s20 = sadd.s32 4294967295, %s821_s19   ;;  %s509_s21 = sadd.s32 4294967294, %s821_s19   ;;  %s821_s19 = sphi %s868_s19, %s21_s19   ;;  %s817_s18 = sphi %s866_s18, %s1182_s18   ;;  %s813_s17 = sphi %s864_s17, %s1181_s17   ;;  %s809_s16 = sphi %s862_s16, %s1180_s16   ;;  %s805_s15 = sphi %s860_s15, %s1179_s15   ;;  %s801_s14 = sphi %s858_s14, %s1178_s14   ;;  %s797_s13 = sphi %s856_s13, %s1177_s13   ;;  %s793_s12 = sphi %s854_s12, %s1176_s12   ;;  %s789_s11 = sphi %s852_s11, %s1175_s11   ;;  %s785_s10 = sphi %s850_s10, %s1174_s10   ;;  %s781_s9 = sphi %s848_s9, %s1173_s9  }
   0xc   : > { %s30_s22 = sadd.s32 1, %s813_s17  ;;  %s33_s23 = sadd.s32 1, %s817_s18 }
   0xd   : > { %p31_p0 = scmp.ge.s32.totalorder %s30_s22, 5  ;;  %s42_s24 = sadd.s32 1, %s801_s14 }
   0xe   : > { %p49_p1 = scmp.ne.s32.totalorder %s801_s14, %s797_s13  ;;  %p50_p2 = scmp.eq.s32.totalorder %s821_s19, 0 }
   0xf   : > { %s1184_s22 = smov (%p31_p0, %s30_s22), 0  ;;  %s1186_s23 = smov (!%p31_p0, %s33_s23), %s817_s18 }
  0x10   : > { %1160 = sst [smem:[#allocation11_spill]] %s1184_s22  ;;  %s38_s25 = ssub.s32 %s813_s17, %s1184_s22 }
  0x11   : > { %p914_p3 = por %p50_p2, %p49_p1  ;;  %p35_p4 = scmp.ge.s32.totalorder %s1186_s23, 2 }
  0x12   : > { %p55_p5 = scmp.ne.s32.totalorder %s797_s13, %s793_s12  ;;  %p56_p6 = scmp.eq.s32.totalorder %s508_s20, 0 }
  0x13   : > { %s96_s27 = sadd.s32 1, %s789_s11  ;;  %s1188_s23 = smov (%p35_p4, %s1186_s23), 0 }
  0x14   : > { %1162 = sst [smem:[#allocation12_spill]] %s1188_s23  ;;  %p922_p7 = por %p56_p6, %p55_p5 }
  0x15   : > { %p106_p8 = scmp.ne.s32.totalorder %s789_s11, %s785_s10  ;;  %s37_s29 = ssub.s32 %s817_s18, %s1188_s23 }
  0x16   : > { %p107_p9 = scmp.eq.s32.totalorder %s508_s20, 9  ;;  %s39_s30 = sor.u32 %s38_s25, %s37_s29 }
  0x17   : > { %p94_p10 = scmp.eq.s32.totalorder %s37_s29, 0  ;;  %p40_p11 = scmp.eq.s32.totalorder %s39_s30, 0 }
  0x18   : > { %p930_p12 = por %p107_p9, %p106_p8  ;;  %p112_p13 = scmp.ne.s32.totalorder %s785_s10, %s781_s9 }
  0x19   : > { %s935_s4 = scalar_select %p94_p10, %s789_s11, %s96_s27  }
  0x1a   : > { %s938_s5 = scalar_select %p40_p11, %s801_s14, %s42_s24  }
  0x1b   : > { %1165 = sst [smem:[#allocation13_spill]] %s935_s4  ;;  %p113_p0 = scmp.eq.s32.totalorder %s509_s21, 9 }
  0x1c   : > { %1166 = sst [smem:[#allocation14_spill]] %s938_s5  ;;  %p511_p2 = scmp.ge.s32.totalorder %s821_s19, 10 }
  0x1d   : > { %p942_p1 = por %p113_p0, %p112_p13 }
  0x1e   : > { %129 = sbr.rel (%p511_p2) target bundleno = 105 (0x69), region = 16 }
  0x1f   : > { %s1167_s6 = scalar_select %p942_p1, 1, 0 }
  0x23   : > { %132 = sbr.rel (!%p914_p3) target bundleno = 70 (0x46), region = 20  ;;  %s133_s7 = sand.u32 (%p914_p3), 1, %s801_s14  }
  0x24   : > { %s513_s8 = sshll.u32 (%p914_p3), %s813_s17, 3  ;;  %s512_s12 = sshll.u32 (%p914_p3), %s133_s7, 6 }
  0x25   : > { %s139_s20 = ssub.s32 (%p914_p3), 34, %s513_s8  ;;  %s954_s25 = scalar_lea.sflag (%p914_p3), [#allocation3], %s133_s7 }
  0x26   : > { %p140_p4 = scmp.lt.s32.totalorder (%p914_p3), %s139_s20, 8  ;;  %s137_s27 = scalar_lea.vmem (%p914_p3), [#allocation2], %s512_s12 }
  0x28   : > { %s1190_s20 = smov (!%p140_p4, %s139_s20), 8 }
  0x29   : > { %s951_s24 = sshll.u32 %s1190_s20, 7 }
  0x2a   : > { %s144_s21 = ssub.s32 1024, %s951_s24 }
  0x2b   : > { %145 = vsyncadd %s954_s25, %s144_s21  ;;  %p515_p5 = scmp.ne.s32.totalorder %s951_s24, 0  ;;  %s539_s29 = smul.u32 34, %s817_s18 }
  0x2c   : > { %s152_s30 = sshll.u32 %s137_s27, 4  ;;  %s649_s27 = scalar_lea.hbm %s1155_s0, 8704  ;;  %s959_s30 = int_to_ptr.vmem [resolvable:$true] %s152_s30 }
  0x2d   : > { %s148_s23 = sadd.s32 %s539_s29, %s513_s8 }
  0x2e   : > { %s516_s22 = sshll.u32 %s148_s23, 7 }
  0x2f   : > { %s964_s4 = scalar_lea.hbm %s1155_s0, %s516_s22 }
  0x30   : > { %s645_s7 = scalar_lea.hbm %s964_s4, %s951_s24 }
  0x31   : > { %p646_p6 = scmp.ne.s32.totalorder %s964_s4, %s645_s7  ;;  %p651_p10 = scmp.lt.s32.totalorder %s649_s27, %s645_s7 }
  0x33   : > { %p647_p8 = pnand %p646_p6, %p515_p5 }
  0x35   : > { %p648_p9 = pneg %p647_p8 }
  0x37   : > { %p653_p11 = pnand %p651_p10, %p648_p9 }
  0x39   : > { %656 = shalt.err (!%p653_p11)
}
  0x3a   : > { %s657_s22 = scalar_lea.vmem %s959_s30, %s951_s24  ;;  %s823_s23 = smov [#allocation2]  }
  0x3b   : > { %p658_p13 = scmp.ne.s32.totalorder %s959_s30, %s657_s22  ;;  %s661_s5 = sshll.u32 %s823_s23, 4  ;;  %s662_s5 = int_to_ptr.vmem [resolvable:$false] %s661_s5 }
  0x3c   : > { %s663_s8 = scalar_lea.vmem %s662_s5, 2048  ;;  %p664_p4 = scmp.lt.s32.totalorder %s959_s30, %s662_s5 }
  0x3d   : > { %p659_p0 = pnand %p658_p13, %p515_p5  ;;  %p665_p6 = scmp.lt.s32.totalorder %s663_s8, %s657_s22 }
  0x3f   : > { %p660_p2 = pneg %p659_p0  ;;  %p666_p8 = por %p665_p6, %p664_p4 }
  0x41   : > { %p667_p1 = pnand %p666_p8, %p660_p2 }
  0x43   : > { %670 = shalt.err (!%p667_p1)
}
  0x44   : > { %s824_s29 = smov 128   ;;  %s825_s20 = smov 8  }
  0x45   : > { %158 = dma.hbm_to_vmem [thread:$0]  (%p515_p5), %s964_s4, %s951_s24, %s959_s30, %s954_s25, %s824_s29, %s824_s29, %s825_s20  }
  0x46 PF: > { %161 = sbr.rel (!%p914_p3) target bundleno = 105 (0x69), region = 24  ;;  %s162_s7 = sand.u32 (%p914_p3), 1, %s801_s14  }
  0x47   : > { %s520_s12 = sshll.u32 (%p914_p3), %s813_s17, 3  ;;  %s519_s21 = sshll.u32 (%p914_p3), %s162_s7, 6 }
  0x48   : > { %s168_s27 = ssub.s32 (%p914_p3), 34, %s520_s12  ;;  %s993_s5 = scalar_lea.sflag (%p914_p3), [#allocation6], %s162_s7 }
  0x49   : > { %p169_p1 = scmp.lt.s32.totalorder (%p914_p3), %s168_s27, 8  ;;  %s166_s4 = scalar_lea.vmem (%p914_p3), [#allocation5], %s519_s21 }
  0x4b   : > { %s1192_s27 = smov (!%p169_p1, %s168_s27), 8 }
  0x4c   : > { %s990_s22 = sshll.u32 %s1192_s27, 7 }
  0x4d   : > { %s173_s23 = ssub.s32 1024, %s990_s22 }
  0x4e   : > { %174 = vsyncadd %s993_s5, %s173_s23  ;;  %p522_p3 = scmp.ne.s32.totalorder %s990_s22, 0  ;;  %s540_s26 = smul.u32 34, %s817_s18 }
  0x4f   : > { %s181_s24 = sshll.u32 %s166_s4, 4  ;;  %s675_s23 = scalar_lea.hbm %s1156_s1, 8704  ;;  %s998_s24 = int_to_ptr.vmem [resolvable:$true] %s181_s24 }
  0x50   : > { %s177_s25 = sadd.s32 %s540_s26, %s520_s12 }
  0x51   : > { %s523_s30 = sshll.u32 %s177_s25, 7 }
  0x52   : > { %s1003_s20 = scalar_lea.hbm %s1156_s1, %s523_s30 }
  0x53   : > { %s671_s7 = scalar_lea.hbm %s1003_s20, %s990_s22 }
  0x54   : > { %p672_p5 = scmp.ne.s32.totalorder %s1003_s20, %s671_s7  ;;  %p677_p11 = scmp.lt.s32.totalorder %s675_s23, %s671_s7 }
  0x56   : > { %p673_p9 = pnand %p672_p5, %p522_p3 }
  0x58   : > { %p674_p10 = pneg %p673_p9 }
  0x5a   : > { %p679_p13 = pnand %p677_p11, %p674_p10 }
  0x5c   : > { %682 = shalt.err (!%p679_p13)
}
  0x5d   : > { %s683_s12 = scalar_lea.vmem %s998_s24, %s990_s22  ;;  %s826_s4 = smov [#allocation5]  }
  0x5e   : > { %p684_p0 = scmp.ne.s32.totalorder %s998_s24, %s683_s12  ;;  %s687_s26 = sshll.u32 %s826_s4, 4  ;;  %s688_s26 = int_to_ptr.vmem [resolvable:$false] %s687_s26 }
  0x5f   : > { %s689_s25 = scalar_lea.vmem %s688_s26, 2048  ;;  %p690_p6 = scmp.lt.s32.totalorder %s998_s24, %s688_s26 }
  0x60   : > { %p685_p2 = pnand %p684_p0, %p522_p3  ;;  %p691_p8 = scmp.lt.s32.totalorder %s689_s25, %s683_s12 }
  0x62   : > { %p686_p4 = pneg %p685_p2  ;;  %p692_p1 = por %p691_p8, %p690_p6 }
  0x64   : > { %p693_p5 = pnand %p692_p1, %p686_p4 }
  0x66   : > { %696 = shalt.err (!%p693_p5)
}
  0x67   : > { %s827_s30 = smov 128   ;;  %s828_s8 = smov 8  }
  0x68   : > { %187 = dma.hbm_to_vmem [thread:$0]  (%p522_p3), %s1003_s20, %s990_s22, %s998_s24, %s993_s5, %s827_s30, %s827_s30, %s828_s8  }
  0x69 PF: > { %p526_p9 = scmp.ge.s32.totalorder %s821_s19, 1  ;;  %p189_p10 = scmp.lt.s32.totalorder %s821_s19, 11 }
  0x6b   : > { %p190_p11 = pnand %p526_p9, %p189_p10 }
  0x6c   : > { %s195_s29 = sand.u32 (!%p190_p11), 1, %s797_s13  }
  0x6d   : > { %193 = sbr.rel (%p190_p11) target bundleno = 191 (0xbf), region = 28  ;;  %s527_s7 = sshll.u32 (!%p190_p11), %s195_s29, 6 }
  0x6e   : > { %s196_s21 = scalar_lea.sflag (!%p190_p11), [#allocation3], %s195_s29  ;;  %s1028_s27 = scalar_lea.vmem (!%p190_p11), [#allocation2], %s527_s7 }
  0x72   : > { %768 = dma.done.wait (%p922_p7), %s196_s21, 1024  }
  0x73   : > { %770 = vsyncadd (%p922_p7), %s196_s21, 4294966272  ;;  %s205_s22 = scalar_lea.sflag [#allocation6], %s195_s29  ;;  %s1034_s5 = scalar_lea.vmem [#allocation5], %s527_s7 }
  0x74   : > { %772 = dma.done.wait (%p922_p7), %s205_s22, 1024  }
  0x75   : > { %774 = vsyncadd (%p922_p7), %s205_s22, 4294966272  ;;  %s231_s24 = sand.u32 1, %s785_s10   ;;  %p530_p3 = scmp.ne.s32.totalorder %s805_s15, 0 }
  0x76   : > { %s529_s20 = sshll.u32 %s231_s24, 5 }
  0x77   : > { %s1043_s23 = scalar_lea.vmem [#allocation7], %s529_s20  ;;  %247 = sbr.rel (%p530_p3) target bundleno = 127 (0x7f), region = 40 }
  0x7c   : > { %v829_v0 = vmov 0.0  }
  0x7d   : > { %248 = vst [vmem:[%s1043_s23] sm:$0xff] %v829_v0  ;;  %249 = vst [vmem:[%s1043_s23 + $0x8] sm:$0xff] %v829_v0 }
  0x7e   : > { %250 = vst [vmem:[%s1043_s23 + $0x10] sm:$0xff] %v829_v0  ;;  %251 = vst [vmem:[%s1043_s23 + $0x18] sm:$0xff] %v829_v0 }
  0x7f PF: > { %p531_p7 = scmp.eq.s32.totalorder %s805_s15, 4 }
  0x81   : > { %255 = sbr.rel (%p531_p7) target bundleno = 151 (0x97), region = 44 }
  0x86   : > { %v256_v1 = vld [vmem:[%s1028_s27] sm:$0xff]  ;;  %v257_v6 = vld [vmem:[%s1028_s27 + $0x8] sm:$0xff]  ;;  %v258_v14 = vld [vmem:[%s1028_s27 + $0x10] sm:$0xff] }
  0x87   : > { %v260_v2 = vld [vmem:[%s1028_s27 + $0x20] sm:$0xff]  ;;  %v261_v8 = vld [vmem:[%s1028_s27 + $0x28] sm:$0xff]  ;;  %v262_v15 = vld [vmem:[%s1028_s27 + $0x30] sm:$0xff] }
  0x88   : > { %v264_v3 = vld [vmem:[%s1034_s5] sm:$0xff]  ;;  %v265_v9 = vld [vmem:[%s1034_s5 + $0x8] sm:$0xff]  ;;  %v266_v18 = vld [vmem:[%s1034_s5 + $0x10] sm:$0xff] }
  0x89   : > { %v268_v4 = vld [vmem:[%s1034_s5 + $0x20] sm:$0xff]  ;;  %v272_v5 = vsub.f32 %v256_v1, %v264_v3  ;;  %v269_v10 = vld [vmem:[%s1034_s5 + $0x28] sm:$0xff]  ;;  %v273_v12 = vsub.f32 %v257_v6, %v265_v9  ;;  %v270_v19 = vld [vmem:[%s1034_s5 + $0x30] sm:$0xff]  ;;  %v274_v22 = vsub.f32 %v258_v14, %v266_v18 }
  0x8a   : > { %v276_v7 = vsub.f32 %v260_v2, %v268_v4  ;;  %v277_v13 = vsub.f32 %v261_v8, %v269_v10  ;;  %v288_v17 = vld [vmem:[%s1043_s23] sm:$0xff]  ;;  %v278_v23 = vsub.f32 %v262_v15, %v270_v19  ;;  %v259_v24 = vld [vmem:[%s1028_s27 + $0x18] sm:$0xff]  ;;  %v289_v28 = vld [vmem:[%s1043_s23 + $0x8] sm:$0xff] }
  0x8b   : > { %v280_v11 = vmul.f32 %v272_v5, %v272_v5  ;;  %v281_v20 = vmul.f32 %v273_v12, %v273_v12  ;;  %v263_v25 = vld [vmem:[%s1028_s27 + $0x38] sm:$0xff]  ;;  %v282_v32 = vmul.f32 %v274_v22, %v274_v22  ;;  %v290_v36 = vld [vmem:[%s1043_s23 + $0x10] sm:$0xff] }
  0x8c   : > { %v284_v16 = vmul.f32 %v276_v7, %v276_v7  ;;  %v285_v21 = vmul.f32 %v277_v13, %v277_v13  ;;  %v267_v26 = vld [vmem:[%s1034_s5 + $0x18] sm:$0xff]  ;;  %v286_v33 = vmul.f32 %v278_v23, %v278_v23 }
  0x8d   : > { %v271_v29 = vld [vmem:[%s1034_s5 + $0x38] sm:$0xff]  ;;  %v275_v30 = vsub.f32 %v259_v24, %v267_v26 }
  0x8e   : > { %v292_v27 = vadd.f32 %v284_v16, %v280_v11  ;;  %v293_v31 = vadd.f32 %v285_v21, %v281_v20  ;;  %v279_v34 = vsub.f32 %v263_v25, %v271_v29  ;;  %v294_v39 = vadd.f32 %v286_v33, %v282_v32  ;;  %v291_v41 = vld [vmem:[%s1043_s23 + $0x18] sm:$0xff] }
  0x8f   : > { %v283_v37 = vmul.f32 %v275_v30, %v275_v30 }
  0x90   : > { %v296_v35 = vadd.f32 %v292_v27, %v288_v17  ;;  %v297_v38 = vadd.f32 %v293_v31, %v289_v28  ;;  %v287_v40 = vmul.f32 %v279_v34, %v279_v34  ;;  %v298_v42 = vadd.f32 %v294_v39, %v290_v36 }
  0x92   : > { %300 = vst [vmem:[%s1043_s23] sm:$0xff] %v296_v35  ;;  %301 = vst [vmem:[%s1043_s23 + $0x8] sm:$0xff] %v297_v38  ;;  %v295_v43 = vadd.f32 %v287_v40, %v283_v37 }
  0x93   : > { %302 = vst [vmem:[%s1043_s23 + $0x10] sm:$0xff] %v298_v42 }
  0x94   : > { %v299_v44 = vadd.f32 %v295_v43, %v291_v41 }
  0x96   : > { %303 = vst [vmem:[%s1043_s23 + $0x18] sm:$0xff] %v299_v44 }
  0x97 PF: > { %p532_p13 = scmp.ne.s32.totalorder %s805_s15, 4 }
  0x99   : > { %307 = sbr.rel (%p532_p13) target bundleno = 167 (0xa7), region = 48 }
  0x9e   : > { %v308_v45 = vld [vmem:[%s1028_s27] sm:$0xff]  ;;  %v309_v48 = vld [vmem:[%s1028_s27 + $0x8] sm:$0xff] }
  0x9f   : > { %v316_v46 = vld [vmem:[%s1034_s5] sm:$0xff]  ;;  %v317_v49 = vld [vmem:[%s1034_s5 + $0x8] sm:$0xff] }
  0xa0   : > { %v324_v47 = vsub.f32 %v308_v45, %v316_v46  ;;  %v365_v50 = vld [vmem:[%s1043_s23] sm:$0xff]  ;;  %v325_v51 = vsub.f32 %v309_v48, %v317_v49  ;;  %v366_v53 = vld [vmem:[%s1043_s23 + $0x8] sm:$0xff] }
  0xa2   : > { %v332_v52 = vmul.f32 %v324_v47, %v324_v47  ;;  %v333_v54 = vmul.f32 %v325_v51, %v325_v51 }
  0xa4   : > { %v373_v55 = vadd.f32 %v365_v50, %v332_v52  ;;  %v374_v56 = vadd.f32 %v366_v53, %v333_v54 }
  0xa6   : > { %377 = vst [vmem:[%s1043_s23] sm:$0xff] %v373_v55  ;;  %378 = vst [vmem:[%s1043_s23 + $0x8] sm:$0xff] %v374_v56 }
  0xa7 PF: > { %s538_s15 = sshll.u32 %s809_s16, 9  ;;  %s395_s26 = sshll.u32 %s1043_s23, 4  ;;  %s1091_s26 = int_to_ptr.vmem [resolvable:$true] %s395_s26 }
  0xa8   : > { %s1088_s4 = scalar_lea.hbm %s1157_s2, %s538_s15  ;;  %s1095_s25 = scalar_lea.sflag [#allocation4], %s231_s24 }
  0xa9   : > { %s697_s30 = scalar_lea.vmem %s1091_s26, 512  ;;  %s830_s16 = smov [#allocation7]  }
  0xaa   : > { %p698_p0 = scmp.ne.s32.totalorder %s1091_s26, %s697_s30  ;;  %s701_s8 = sshll.u32 %s830_s16, 4  ;;  %s702_s8 = int_to_ptr.vmem [resolvable:$false] %s701_s8 }
  0xab   : > { %s703_s29 = scalar_lea.vmem %s702_s8, 1024  ;;  %p704_p6 = scmp.lt.s32.totalorder %s1091_s26, %s702_s8 }
  0xac   : > { %p699_p2 = pnand %p698_p0, %p930_p12  ;;  %p705_p8 = scmp.lt.s32.totalorder %s703_s29, %s697_s30 }
  0xae   : > { %p700_p4 = pneg %p699_p2  ;;  %p706_p1 = por %p705_p8, %p704_p6 }
  0xb0   : > { %p707_p5 = pnand %p706_p1, %p700_p4 }
  0xb2   : > { %710 = shalt.err (!%p707_p5)
}
  0xb3   : > { %s711_s7 = scalar_lea.hbm %s1088_s4, 512  ;;  %s715_s22 = scalar_lea.hbm %s1157_s2, 1024 }
  0xb4   : > { %p712_p9 = scmp.ne.s32.totalorder %s1088_s4, %s711_s7  ;;  %p716_p3 = scmp.lt.s32.totalorder %s1088_s4, %s1157_s2 }
  0xb5   : > { %p717_p7 = scmp.lt.s32.totalorder %s715_s22, %s711_s7 }
  0xb6   : > { %p713_p10 = pnand %p712_p9, %p930_p12 }
  0xb7   : > { %p718_p13 = por %p717_p7, %p716_p3 }
  0xb8   : > { %p714_p11 = pneg %p713_p10 }
  0xba   : > { %p719_p0 = pnand %p718_p13, %p714_p11 }
  0xbc   : > { %722 = shalt.err (!%p719_p0)
}
  0xbd   : > { %s831_s20 = smov 128   ;;  %s832_s23 = smov 8  }
  0xbe   : > { %543 = dma.vmem_to_hbm [thread:$0]  (%p930_p12), %s1091_s26, 512, %s1088_s4, %s1095_s25, %s831_s20, %s831_s20, %s832_s23  }
  0xbf PF: > { %p549_p2 = scmp.ge.s32.totalorder %s821_s19, 2  ;;  %s410_s15 = sand.u32 1, %s781_s9  }
  0xc0   : > { %p1168_p4 = scmp.ne.s32.totalorder %s1167_s6, 0  ;;  %s411_s28 = scalar_lea.sflag [#allocation4], %s410_s15 }
  0xc2   : > { %p546_p6 = pnand %p549_p2, %p1168_p4 }
  0xc4   : > { %p547_p8 = pneg %p546_p6 }
  0xc6   : > { %776 = dma.done.wait (%p547_p8), %s411_s28, 512  }
  0xc7   : > { %778 = vsyncadd (%p547_p8), %s411_s28, 4294966784  ;;  %s21_s19 = sadd.s32 1, %s821_s19   ;;  %s1169_s12 = sld [smem:[#allocation13_spill]] }
  0xc8   : > { %p18_p1 = scmp.ge.s32.totalorder %s21_s19, 12   ;;  %s1170_s3 = sld [smem:[#allocation14_spill]] }
  0xc9   : > { %s1171_s4 = sld [smem:[#allocation11_spill]]  ;;  %s1173_s9 = smov %s785_s10 }
  0xca   : > { %s1172_s26 = sld [smem:[#allocation12_spill]]  ;;  %s1174_s10 = smov %s789_s11 }
  0xcb   : > { %s1179_s15 = smov %s813_s17  ;;  %s1180_s16 = smov %s817_s18 }
  0xcc   :  { %20 = sbr.rel (!%p18_p1) target bundleno = 11 (0xb), region = 98 }
  0xcd   : > { %s1175_s11 = smov %s1169_s12  ;;  %s1176_s12 = smov %s797_s13 }
  0xce   : > { %s1177_s13 = smov %s801_s14  ;;  %s1178_s14 = smov %s1170_s3 }
  0xcf   : > { %s1181_s17 = smov %s1171_s4 }
  0xd0   : > { %s1182_s18 = smov %s1172_s26 }
  0xd1   :  { %416 = vsyncpa [#allocation3], 1 }
  0xd2   :  { %418 = vsyncpa [#allocation3 + $0x1], 1 }
  0xd3   :  { %419 = vsyncpa [#allocation6], 1 }
  0xd4   :  { %421 = vsyncpa [#allocation6 + $0x1], 1 }
  0xd5   :  { %422 = vsyncpa [#allocation4], 1 }
  0xd6   :  { %424 = vsyncpa [#allocation4 + $0x1], 1 }

</bundles_post_ra>
